<compile_context>
chip_gen: v6e
topology: v6e:2x2x1
jax: 0.10.0
libtpu: 0.0.40
codegen_flags: <defaults>
</compile_context>

<pallas_src>
import math
import functools

import jax
import jax.numpy as jnp
from jax import lax
from jax.experimental import pallas as pl
from jax.experimental.pallas import tpu as pltpu


_SQRT_HALF = 0.7071067811865476  # 1/sqrt(2)


def _mlp_kernel(x_ref, w1_ref, b1_ref, w2_ref, b2_ref, o_ref, acc_ref):
    h_idx = pl.program_id(1)

    @pl.when(h_idx == 0)
    def _init():
        acc_ref[...] = jnp.zeros_like(acc_ref)

    # ---- fc1 partial: (tn, Din) @ (Din, th), f32 accumulation on the MXU ----
    h = jnp.dot(x_ref[...], w1_ref[...], preferred_element_type=jnp.float32)
    h = h + b1_ref[...].astype(jnp.float32)

    # ---- GELU (torch nn.GELU default: exact erf), computed in f32 ----
    h = h * 0.5 * (1.0 + lax.erf(h * _SQRT_HALF))

    # ---- Dropout: identity in eval mode ----
    # TODO(synk): train-mode dropout (RNG masking) not implemented.

    # ---- fc2 partial: accumulate (tn, th) @ (th, Dout) into f32 scratch ----
    acc_ref[...] += jnp.dot(h.astype(w2_ref.dtype), w2_ref[...],
                            preferred_element_type=jnp.float32)

    @pl.when(h_idx == pl.num_programs(1) - 1)
    def _finalize():
        o_ref[...] = (acc_ref[...] + b2_ref[...].astype(jnp.float32)).astype(o_ref.dtype)


def _round_up(a, m):
    return (a + m - 1) // m * m


def mlp_forward(x, w1, b1, w2, b2, *, row_tile=256, h_tile=512,
                vmem_limit_bytes=48 * 1024 * 1024):
    """Fused Mlp forward.

    x : (..., Din)   tokens, feature dim last
    w1: (Din, H)     fc1 weight, stored (in, out)  (= torch fc1.weight.T)
    b1: (H,)         fc1 bias
    w2: (H, Dout)    fc2 weight, stored (in, out)  (= torch fc2.weight.T)
    b2: (Dout,)      fc2 bias
    """
    orig_shape = x.shape
    Din = orig_shape[-1]
    H = w1.shape[1]
    Dout = w2.shape[1]
    N = math.prod(orig_shape[:-1])
    x2 = x.reshape(N, Din)

    # Tile sizes aligned to the (8, 128) vreg layout.
    row_tile = max(8, _round_up(row_tile, 8))
    h_tile = max(128, _round_up(h_tile, 128))

    tn = min(row_tile, _round_up(N, 8))
    Np = _round_up(N, tn)
    Din_p = _round_up(Din, 128)
    Dout_p = _round_up(Dout, 128)
    Hp = _round_up(H, 128)
    th = min(h_tile, Hp)
    Hp = _round_up(Hp, th)

    # Zero-pad so every BlockSpec tiles its array exactly. The zero padding is
    # mathematically inert: padded w1 rows / w2 cols / biases are zero, and
    # GELU(0) = 0, so padded hidden/output columns contribute nothing.
    xp = jnp.pad(x2, ((0, Np - N), (0, Din_p - Din)))
    w1p = jnp.pad(w1, ((0, Din_p - Din), (0, Hp - H)))
    b1p = jnp.pad(b1.reshape(1, -1), ((0, 0), (0, Hp - H)))
    w2p = jnp.pad(w2, ((0, Hp - H), (0, Dout_p - Dout)))
    b2p = jnp.pad(b2.reshape(1, -1), ((0, 0), (0, Dout_p - Dout)))

    grid = (Np // tn, Hp // th)

    out_p = pl.pallas_call(
        _mlp_kernel,
        out_shape=jax.ShapeDtypeStruct((Np, Dout_p), x.dtype),
        grid=grid,
        in_specs=[
            pl.BlockSpec((tn, Din_p), lambda i, h: (i, 0)),    # x row tile
            pl.BlockSpec((Din_p, th), lambda i, h: (0, h)),    # w1 column block
            pl.BlockSpec((1, th), lambda i, h: (0, h)),        # b1 block
            pl.BlockSpec((th, Dout_p), lambda i, h: (h, 0)),   # w2 row block
            pl.BlockSpec((1, Dout_p), lambda i, h: (0, 0)),    # b2 (invariant)
        ],
        out_specs=pl.BlockSpec((tn, Dout_p), lambda i, h: (i, 0)),
        scratch_shapes=[pltpu.VMEM((tn, Dout_p), jnp.float32)],
        compiler_params=pltpu.CompilerParams(
            dimension_semantics=("parallel", "arbitrary"),
            vmem_limit_bytes=vmem_limit_bytes,
        ),
    )(xp, w1p, b1p, w2p, b2p)

    out = out_p[:N, :Dout]
    return out.reshape(*orig_shape[:-1], Dout)


def _reference(x, w1, b1, w2, b2):
    h = x @ w1 + b1
    h = 0.5 * h * (1.0 + lax.erf(h * _SQRT_HALF))
    return h @ w2 + b2


if __name__ == "__main__":
    # Mlp(in_features=96, hidden_features=320, drop=0.0) on x of shape (2, 8, 96).
    # Deliberately non-aligned dims to exercise the wrapper padding, and a small
    # h_tile so the H-reduction grid axis runs multiple accumulation steps.
    B, S, in_features, hidden = 2, 8, 96, 320
    out_features = in_features

    key = jax.random.PRNGKey(0)
    k_x, k_w1, k_b1, k_w2, k_b2 = jax.random.split(key, 5)

    x = jax.random.normal(k_x, (B, S, in_features), dtype=jnp.float32)

    # Linear params, deterministic random init, stored as (in, out).
    w1 = jax.random.normal(k_w1, (in_features, hidden), dtype=jnp.float32) * 0.05
    b1 = jax.random.normal(k_b1, (hidden,), dtype=jnp.float32) * 0.05
    w2 = jax.random.normal(k_w2, (hidden, out_features), dtype=jnp.float32) * 0.05
    b2 = jax.random.normal(k_b2, (out_features,), dtype=jnp.float32) * 0.05

    out = mlp_forward(x, w1, b1, w2, b2, h_tile=128)
    out = jax.block_until_ready(out)

    ref = _reference(x, w1, b1, w2, b2)
    assert out.shape == (B, S, out_features)
    assert jnp.allclose(out, ref, atol=1e-4, rtol=1e-4), "mismatch vs reference"

    print("KERNEL_OK")
</pallas_src>

<mosaic_0001>
module attributes {stable_mosaic.version = 11 : i64} {
  func.func @_mlp_kernel(%arg0: i32, %arg1: i32, %arg2: memref<16x128xf32, #tpu.memory_space<vmem>>, %arg3: memref<128x128xf32, #tpu.memory_space<vmem>>, %arg4: memref<1x128xf32, #tpu.memory_space<vmem>>, %arg5: memref<128x128xf32, #tpu.memory_space<vmem>>, %arg6: memref<1x128xf32, #tpu.memory_space<vmem>>, %arg7: memref<16x128xf32, #tpu.memory_space<vmem>>, %arg8: memref<16x128xf32, #tpu.memory_space<vmem>>) attributes {dimension_semantics = [#tpu.dimension_semantics<parallel>, #tpu.dimension_semantics<arbitrary>], iteration_bounds = array<i64: 1, 3>, scalar_prefetch = 0 : i64, scratch_operands = 1 : i64, tpu.core_type = #tpu.core_type<tc>, window_params = [{transform_indices = @transform_0, window_bounds = array<i64: 16, 128>}, {transform_indices = @transform_1, window_bounds = array<i64: 128, 128>}, {transform_indices = @transform_2, window_bounds = array<i64: 1, 128>}, {transform_indices = @transform_3, window_bounds = array<i64: 128, 128>}, {pipeline_mode = #tpu.pipeline_mode<synchronous>, transform_indices = @transform_4, window_bounds = array<i64: 1, 128>}, {transform_indices = @transform_5, window_bounds = array<i64: 16, 128>}]} {
    %c0_i32 = arith.constant 0 : i32
    %0 = arith.cmpi eq, %arg1, %c0_i32 : i32
    %1 = arith.extui %0 : i1 to i32
    %c0_i32_0 = arith.constant 0 : i32
    %2 = arith.cmpi ne, %1, %c0_i32_0 : i32
    scf.if %2 {
      %cst_17 = arith.constant 0.000000e+00 : f32
      %25 = vector.broadcast %cst_17 : f32 to vector<16x128xf32>
      %c0_18 = arith.constant 0 : index
      %c0_19 = arith.constant 0 : index
      %26 = vector.load %arg8[%c0_18, %c0_19] : memref<16x128xf32, #tpu.memory_space<vmem>>, vector<16x128xf32>
      tpu.vector_store %arg8[%c0_18, %c0_19], %25 {strides = array<i32>} : memref<16x128xf32, #tpu.memory_space<vmem>>, vector<16x128xf32>,
    } else {
    }
    %c0 = arith.constant 0 : index
    %c0_1 = arith.constant 0 : index
    %3 = vector.load %arg2[%c0, %c0_1] : memref<16x128xf32, #tpu.memory_space<vmem>>, vector<16x128xf32>
    %c0_2 = arith.constant 0 : index
    %c0_3 = arith.constant 0 : index
    %4 = vector.load %arg3[%c0_2, %c0_3] : memref<128x128xf32, #tpu.memory_space<vmem>>, vector<128x128xf32>
    %cst = arith.constant dense<0.000000e+00> : vector<16x128xf32>
    %5 = tpu.matmul %3, %4, %cst {dimension_numbers = #tpu.dot_dimension_numbers<[1], [0], [0], [1], [0, 0, 1, 1], [], []>} : vector<16x128xf32>, vector<128x128xf32>, vector<16x128xf32> -> vector<16x128xf32>
    %c0_4 = arith.constant 0 : index
    %c0_5 = arith.constant 0 : index
    %6 = vector.load %arg4[%c0_4, %c0_5] : memref<1x128xf32, #tpu.memory_space<vmem>>, vector<1x128xf32>
    %7 = vector.broadcast %6 : vector<1x128xf32> to vector<16x128xf32>
    %8 = arith.addf %5, %7 : vector<16x128xf32>
    %cst_6 = arith.constant 5.000000e-01 : f32
    %9 = vector.broadcast %cst_6 : f32 to vector<16x128xf32>
    %10 = arith.mulf %8, %9 : vector<16x128xf32>
    %cst_7 = arith.constant 0.707106769 : f32
    %11 = vector.broadcast %cst_7 : f32 to vector<16x128xf32>
    %12 = arith.mulf %8, %11 : vector<16x128xf32>
    %13 = math.erf %12 : vector<16x128xf32>
    %cst_8 = arith.constant 1.000000e+00 : f32
    %14 = vector.broadcast %cst_8 : f32 to vector<16x128xf32>
    %15 = arith.addf %14, %13 : vector<16x128xf32>
    %16 = arith.mulf %10, %15 : vector<16x128xf32>
    %c0_9 = arith.constant 0 : index
    %c0_10 = arith.constant 0 : index
    %17 = vector.load %arg8[%c0_9, %c0_10] : memref<16x128xf32, #tpu.memory_space<vmem>>, vector<16x128xf32>
    %c0_11 = arith.constant 0 : index
    %c0_12 = arith.constant 0 : index
    %18 = vector.load %arg5[%c0_11, %c0_12] : memref<128x128xf32, #tpu.memory_space<vmem>>, vector<128x128xf32>
    %cst_13 = arith.constant dense<0.000000e+00> : vector<16x128xf32>
    %19 = tpu.matmul %16, %18, %cst_13 {dimension_numbers = #tpu.dot_dimension_numbers<[1], [0], [0], [1], [0, 0, 1, 1], [], []>} : vector<16x128xf32>, vector<128x128xf32>, vector<16x128xf32> -> vector<16x128xf32>
    %20 = arith.addf %17, %19 : vector<16x128xf32>
    %c0_14 = arith.constant 0 : index
    %c0_15 = arith.constant 0 : index
    %21 = vector.load %arg8[%c0_14, %c0_15] : memref<16x128xf32, #tpu.memory_space<vmem>>, vector<16x128xf32>
    tpu.vector_store %arg8[%c0_14, %c0_15], %20 {strides = array<i32>} : memref<16x128xf32, #tpu.memory_space<vmem>>, vector<16x128xf32>,
    %c2_i32 = arith.constant 2 : i32
    %22 = arith.cmpi eq, %arg1, %c2_i32 : i32
    %23 = arith.extui %22 : i1 to i32
    %c0_i32_16 = arith.constant 0 : i32
    %24 = arith.cmpi ne, %23, %c0_i32_16 : i32
    scf.if %24 {
      %c0_17 = arith.constant 0 : index
      %c0_18 = arith.constant 0 : index
      %25 = vector.load %arg8[%c0_17, %c0_18] : memref<16x128xf32, #tpu.memory_space<vmem>>, vector<16x128xf32>
      %c0_19 = arith.constant 0 : index
      %c0_20 = arith.constant 0 : index
      %26 = vector.load %arg6[%c0_19, %c0_20] : memref<1x128xf32, #tpu.memory_space<vmem>>, vector<1x128xf32>
      %27 = vector.broadcast %26 : vector<1x128xf32> to vector<16x128xf32>
      %28 = arith.addf %25, %27 : vector<16x128xf32>
      %c0_21 = arith.constant 0 : index
      %c0_22 = arith.constant 0 : index
      %29 = vector.load %arg7[%c0_21, %c0_22] : memref<16x128xf32, #tpu.memory_space<vmem>>, vector<16x128xf32>
      tpu.vector_store %arg7[%c0_21, %c0_22], %28 {strides = array<i32>} : memref<16x128xf32, #tpu.memory_space<vmem>>, vector<16x128xf32>,
    } else {
    }
    return
  }
  func.func @transform_0(%arg0: i32, %arg1: i32) -> (i32, i32) {
    %c0_i32 = arith.constant 0 : i32
    %c0_i32_0 = arith.constant 0 : i32
    return %arg0, %c0_i32 : i32, i32
  }
  func.func @transform_1(%arg0: i32, %arg1: i32) -> (i32, i32) {
    %c0_i32 = arith.constant 0 : i32
    %c0_i32_0 = arith.constant 0 : i32
    return %c0_i32, %arg1 : i32, i32
  }
  func.func @transform_2(%arg0: i32, %arg1: i32) -> (i32, i32) {
    %c0_i32 = arith.constant 0 : i32
    %c0_i32_0 = arith.constant 0 : i32
    return %c0_i32, %arg1 : i32, i32
  }
  func.func @transform_3(%arg0: i32, %arg1: i32) -> (i32, i32) {
    %c0_i32 = arith.constant 0 : i32
    %c0_i32_0 = arith.constant 0 : i32
    return %arg1, %c0_i32 : i32, i32
  }
  func.func @transform_4(%arg0: i32, %arg1: i32) -> (i32, i32) {
    %c0_i32 = arith.constant 0 : i32
    %c0_i32_0 = arith.constant 0 : i32
    %c0_i32_1 = arith.constant 0 : i32
    return %c0_i32, %c0_i32_0 : i32, i32
  }
  func.func @transform_5(%arg0: i32, %arg1: i32) -> (i32, i32) {
    %c0_i32 = arith.constant 0 : i32
    %c0_i32_0 = arith.constant 0 : i32
    return %arg0, %c0_i32 : i32, i32
  }
}

</mosaic_0001>

<bundles_post_ra>
// kernel: tpu_custom_call.1
= control target key start
LH: loop header
LB: loop body
LE: loop exit
PB: predicated region body
PF: predicated region fallthrough
CT: control target
= control target key end

     0   :  { %10 = vsyncpa [#allocation4], 0  ;;  %s1319_s0 = inlined_call_operand.hbm [shape: f32[16,128], index: 0, kind: input, shape index: {}]   ;;  %s1320_s1 = inlined_call_operand.hbm [shape: f32[128,384], index: 1, kind: input, shape index: {}]   ;;  %s1321_s2 = inlined_call_operand.vmem [shape: f32[1,384], index: 2, kind: input, shape index: {}]   ;;  %s1322_s3 = inlined_call_operand.hbm [shape: f32[384,128], index: 3, kind: input, shape index: {}]   ;;  %s1323_s4 = inlined_call_operand.vmem [shape: f32[1,128], index: 4, kind: input, shape index: {}]   ;;  %s1324_s5 = inlined_call_operand.hbm [shape: f32[16,128], index: 5, kind: output, shape index: {}]  }
   0x1   :  { %11 = vsyncpa [#allocation7], 0 }
   0x2   :  { %13 = vsyncpa [#allocation7 + $0x1], 0 }
   0x3   :  { %14 = vsyncpa [#allocation5], 0  ;;  %s1092_s18 = smov 0   ;;  %s1094_s19 = smov 0  }
   0x4   :  { %s1096_s20 = smov 0   ;;  %s1098_s21 = smov 0  }
   0x5   :  { %s1100_s22 = smov 0   ;;  %s1102_s23 = smov 0  }
   0x6 LB: > { %s29_s24 = sadd.s32 1, %s1046_s22  ;;  %s65_s25 = sadd.s32 1, %s1038_s20  ;;  %s1050_s23 = sphi %s1102_s23, %s20_s23   ;;  %s1046_s22 = sphi %s1100_s22, %s1340_s22   ;;  %s1042_s21 = sphi %s1098_s21, %s1339_s21   ;;  %s1038_s20 = sphi %s1096_s20, %s1338_s20   ;;  %s1034_s19 = sphi %s1094_s19, %s1337_s19   ;;  %s1030_s18 = sphi %s1092_s18, %s1336_s18  }
   0x7   : > { %p30_p0 = scmp.ge.s32.totalorder %s29_s24, 3  ;;  %p72_p1 = scmp.ne.s32.totalorder %s1038_s20, %s1034_s19 }
   0x8   : > { %p73_p2 = scmp.eq.s32.totalorder %s1050_s23, 0  ;;  %p822_p5 = scmp.lt.s32.totalorder %s1050_s23, 3 }
   0x9   : > { %s1342_s24 = smov (%p30_p0, %s29_s24), 0  ;;  %s220_s28 = sand.u32 1, %s1050_s23  }
   0xa   : > { %p1129_p3 = por %p73_p2, %p72_p1  ;;  %s62_s27 = ssub.s32 %s1046_s22, %s1342_s24 }
   0xb   : > { %p63_p4 = scmp.eq.s32.totalorder %s62_s27, 0  ;;  %s222_s29 = sand.u32 1, %s1038_s20  }
   0xc   : > { %s1141_s6 = sshll.u32 %s222_s29, 7  ;;  %s675_s7 = sshll.u32 %s1046_s22, 7 }
   0xd   : > { %s1139_s30 = scalar_select %p63_p4, %s1038_s20, %s65_s25  }
   0xe   : > { %s229_s10 = scalar_lea.hbm %s1320_s1, %s675_s7  ;;  %s224_s11 = scalar_lea.vmem [#allocation6], %s1141_s6 }
   0xf   : > { %s230_s12 = sshll.u32 %s224_s11, 4  ;;  %p1150_p6 = pnand %p822_p5, %p1129_p3  ;;  %s231_s12 = int_to_ptr.vmem [resolvable:$true] %s230_s12 }
  0x10   : > { %s1154_s14 = scalar_lea.sflag [#allocation7], %s220_s28  ;;  %s899_s15 = scalar_lea.vmem %s231_s12, 2048 }
  0x11   : > { %p888_p7 = pneg %p1150_p6  ;;  %p900_p8 = scmp.ne.s32.totalorder %s231_s12, %s899_s15 }
  0x12   : > { %s1052_s16 = smov [#allocation6]  }
  0x13   : > { %p902_p9 = pnand %p900_p8, %p888_p7  ;;  %s904_s17 = sshll.u32 %s1052_s16, 4  ;;  %s905_s17 = int_to_ptr.vmem [resolvable:$false] %s904_s17 }
  0x14   : > { %s906_s25 = scalar_lea.vmem %s905_s17, 4096  ;;  %p907_p11 = scmp.lt.s32.totalorder %s231_s12, %s905_s17 }
  0x15   : > { %p903_p10 = pneg %p902_p9  ;;  %p908_p12 = scmp.lt.s32.totalorder %s906_s25, %s899_s15 }
  0x17   : > { %p909_p13 = por %p908_p12, %p907_p11 }
  0x19   : > { %p910_p0 = pnand %p909_p13, %p903_p10 }
  0x1b   : > { %913 = shalt.err (!%p910_p0)
}
  0x1c   : > { %s1053_s26 = smov 384   ;;  %s1325_s27 = smov 128  }
  0x1d   : > { %s1327_s28 = smov 8   ;;  %s1167_s29 = sadd.s32 4294967295, %s1050_s23  }
  0x1e   : > { %817 = dma.hbm_to_vmem [thread:$0]  (!%p1150_p6), %s229_s10, 2048, %s231_s12, %s1154_s14, %s1053_s26, %s1325_s27, %s1327_s28  }
  0x1f   : > { %p78_p1 = scmp.ne.s32.totalorder %s1034_s19, %s1030_s18  ;;  %p79_p2 = scmp.eq.s32.totalorder %s1167_s29, 0 }
  0x20   : > { %p671_p3 = scmp.ge.s32.totalorder %s1050_s23, 1  ;;  %p188_p4 = scmp.lt.s32.totalorder %s1050_s23, 4 }
  0x21   : > { %p1176_p5 = por %p79_p2, %p78_p1  ;;  %s1056_s9 = smov [#allocation3]  }
  0x22   : > { %p1180_p8 = pnand %p671_p3, %p188_p4  ;;  %s203_s10 = sshll.u32 %s1056_s9, 4  ;;  %s1184_s10 = int_to_ptr.vmem [resolvable:$true] %s203_s10 }
  0x23   : > { %s691_s18 = sshll.u32 %s1046_s22, 11  ;;  %s250_s16 = scalar_lea.vmem [#allocation8], %s1141_s6 }
  0x24   : > { %p810_p9 = pneg %p1180_p8  ;;  %s256_s15 = scalar_lea.hbm %s1322_s3, %s691_s18 }
  0x25   : > { %s257_s17 = sshll.u32 %s250_s16, 4  ;;  %s1057_s9 = smov [#allocation8]   ;;  %s258_s17 = int_to_ptr.vmem [resolvable:$true] %s257_s17 }
  0x26   : > { %p1195_p10 = pnand %p810_p9, %p79_p2  ;;  %s927_s26 = scalar_lea.vmem %s258_s17, 2048 }
  0x27   : > { %p928_p11 = scmp.ne.s32.totalorder %s258_s17, %s927_s26  ;;  %s932_s27 = sshll.u32 %s1057_s9, 4  ;;  %s933_s27 = int_to_ptr.vmem [resolvable:$false] %s932_s27 }
  0x28   : > { %s934_s28 = scalar_lea.vmem %s933_s27, 4096  ;;  %p935_p0 = scmp.lt.s32.totalorder %s258_s17, %s933_s27 }
  0x29   : > { %p930_p12 = pnand %p928_p11, %p888_p7  ;;  %p936_p1 = scmp.lt.s32.totalorder %s934_s28, %s927_s26 }
  0x2b   : > { %p931_p13 = pneg %p930_p12  ;;  %p937_p3 = por %p936_p1, %p935_p0 }
  0x2d   : > { %p938_p4 = pnand %p937_p3, %p931_p13 }
  0x2f   : > { %941 = shalt.err (!%p938_p4)
}
  0x30   : > { %s1334_s6 = smov 8   ;;  %s1335_s18 = smov 128  }
  0x31   : > { %820 = dma.hbm_to_vmem [thread:$0]  (!%p1150_p6), %s256_s15, 2048, %s258_s17, %s1154_s14, %s1335_s18, %s1335_s18, %s1334_s6  }
  0x32   : > { %p944_p7 = pneg %p1195_p10  ;;  %s953_s11 = scalar_lea.vmem %s1184_s10, 256 }
  0x33   : > { %p954_p9 = scmp.ne.s32.totalorder %s1184_s10, %s953_s11  ;;  %p961_p13 = scmp.lt.s32.totalorder %s1184_s10, %s1184_s10 }
  0x34   : > { %p962_p0 = scmp.lt.s32.totalorder %s953_s11, %s953_s11 }
  0x35   : > { %p956_p11 = pnand %p954_p9, %p944_p7 }
  0x36   : > { %p963_p1 = por %p962_p0, %p961_p13 }
  0x37   : > { %p957_p12 = pneg %p956_p11 }
  0x39   : > { %p964_p3 = pnand %p963_p1, %p957_p12 }
  0x3b   : > { %967 = shalt.err (!%p964_p3)
}
  0x3c   : > { %813 = dma.hbm_to_vmem [thread:$0]  (!%p1195_p10), %s1319_s0, 256, %s1184_s10, [#allocation4], %s1335_s18, %s1335_s18, %s1334_s6  }
  0x3d   : > { %269 = sbr.rel (%p1180_p8) target bundleno = 556 (0x22c), region = 40 }
  0x42   : > { %1017 = dma.done.wait (%p79_p2), [#allocation4], 256  }
  0x43   : > { %1019 = vsyncadd (%p79_p2), [#allocation4], 4294967040  ;;  %s275_s27 = sand.u32 1, %s1167_s29   ;;  %s277_s28 = sand.u32 1, %s1034_s19  }
  0x44   : > { %s681_s12 = sshll.u32 %s277_s28, 7  ;;  %s276_s15 = scalar_lea.sflag [#allocation7], %s275_s27 }
  0x45   : > { %s1231_s16 = scalar_lea.vmem [#allocation6], %s681_s12 }
  0x46   : > { %1021 = dma.done.wait (%p1176_p5), %s276_s15, 4096  }
  0x47   : > { %1023 = vsyncadd (%p1176_p5), %s276_s15, 4294963200  ;;  %p319_p6 = scmp.lt.s32.totalorder %s1042_s21, 2  ;;  %s1245_s26 = scalar_lea.vmem [#allocation8], %s681_s12 }
  0x48   : > { %p683_p2 = scmp.ne.s32.totalorder %s1042_s21, 0 }
  0x49   : > { %s1239_s8 = scalar_select %p319_p6, %s1042_s21, 2 }
  0x4a   : > { %327 = sbr.rel (%p683_p2) target bundleno = 81 (0x51), region = 56 }
  0x4b   : > { %s321_s25 = scalar_lea.vmem %s1321_s2, %s1239_s8 }
  0x4f   : > { %v1058_v0 = vmov 0.0  }
  0x50   : > { %328 = vst [vmem:[#allocation2] sm:$0xff] %v1058_v0  ;;  %329 = vst [vmem:[#allocation2 + $0x8] sm:$0xff] %v1058_v0 }
  0x51 PF: > { %v347_v1 = vld [vmem:[%s1231_s16 + $0x78] sm:$0xff]  ;;  %v346_v2 = vld [vmem:[%s1231_s16 + $0x70] sm:$0xff]  ;;  %v345_v3 = vld [vmem:[%s1231_s16 + $0x68] sm:$0xff]  ;;  %p685_p5 = scmp.ne.s32.totalorder %s1042_s21, 2 }
  0x52   : > { %728 = vmatprep.subr.mxu0 %v347_v1  ;;  %v344_v4 = vld [vmem:[%s1231_s16 + $0x60] sm:$0xff]  ;;  %v330_v5 = vld [vmem:[#allocation3] sm:$0xff]  ;;  %v343_v6 = vld [vmem:[%s1231_s16 + $0x58] sm:$0xff] }
  0x53   : > { %729 = vmatpush3.msra.mxu0 %v347_v1  ;;  %760 = vmatprep.mubr.f32.mxu0 %v330_v5  ;;  %v457_v7 = vld [vmem:[%s1245_s26 + $0x78] sm:$0xff]  ;;  %v456_v8 = vld [vmem:[%s1245_s26 + $0x70] sm:$0xff]  ;;  %v455_v10 = vld [vmem:[%s1245_s26 + $0x68] sm:$0xff] }
  0x54   : > { %730 = vmatprep.subr.mxu0 %v346_v2  ;;  %763 = vmatprep.subr.mxu1 %v457_v7  ;;  %v342_v9 = vld [vmem:[%s1231_s16 + $0x50] sm:$0xff]  ;;  %v341_v11 = vld [vmem:[%s1231_s16 + $0x48] sm:$0xff]  ;;  %v340_v12 = vld [vmem:[%s1231_s16 + $0x40] sm:$0xff] }
  0x55   : > { %731 = vmatpush3.msra.mxu0 %v346_v2  ;;  %764 = vmatpush3.msra.mxu1 %v457_v7  ;;  %v339_v13 = vld [vmem:[%s1231_s16 + $0x38] sm:$0xff]  ;;  %v338_v14 = vld [vmem:[%s1231_s16 + $0x30] sm:$0xff]  ;;  %v337_v15 = vld [vmem:[%s1231_s16 + $0x28] sm:$0xff] }
  0x56   : > { %732 = vmatprep.subr.mxu0 %v345_v3  ;;  %765 = vmatprep.subr.mxu1 %v456_v8  ;;  %v336_v16 = vld [vmem:[%s1231_s16 + $0x20] sm:$0xff]  ;;  %v335_v17 = vld [vmem:[%s1231_s16 + $0x18] sm:$0xff]  ;;  %v334_v18 = vld [vmem:[%s1231_s16 + $0x10] sm:$0xff] }
  0x57   : > { %733 = vmatpush3.msra.mxu0 %v345_v3  ;;  %766 = vmatpush3.msra.mxu1 %v456_v8  ;;  %v333_v19 = vld [vmem:[%s1231_s16 + $0x8] sm:$0xff]  ;;  %v332_v20 = vld [vmem:[%s1231_s16] sm:$0xff]  ;;  %v331_v21 = vld [vmem:[#allocation3 + $0x8] sm:$0xff] }
  0x58   : > { %734 = vmatprep.subr.mxu0 %v344_v4  ;;  %767 = vmatprep.subr.mxu1 %v455_v10  ;;  %v454_v22 = vld [vmem:[%s1245_s26 + $0x60] sm:$0xff]  ;;  %v453_v23 = vld [vmem:[%s1245_s26 + $0x58] sm:$0xff]  ;;  %v452_v24 = vld [vmem:[%s1245_s26 + $0x50] sm:$0xff] }
  0x59   : > { %735 = vmatpush3.msra.mxu0 %v344_v4  ;;  %768 = vmatpush3.msra.mxu1 %v455_v10  ;;  %v451_v25 = vld [vmem:[%s1245_s26 + $0x48] sm:$0xff]  ;;  %v450_v26 = vld [vmem:[%s1245_s26 + $0x40] sm:$0xff]  ;;  %v449_v27 = vld [vmem:[%s1245_s26 + $0x38] sm:$0xff] }
  0x5a   : > { %736 = vmatprep.subr.mxu0 %v343_v6  ;;  %769 = vmatprep.subr.mxu1 %v454_v22  ;;  %v448_v28 = vld [vmem:[%s1245_s26 + $0x30] sm:$0xff]  ;;  %v447_v29 = vld [vmem:[%s1245_s26 + $0x28] sm:$0xff]  ;;  %v446_v30 = vld [vmem:[%s1245_s26 + $0x20] sm:$0xff] }
  0x5b   : > { %737 = vmatpush3.msra.mxu0 %v343_v6  ;;  %770 = vmatpush3.msra.mxu1 %v454_v22  ;;  %v445_v31 = vld [vmem:[%s1245_s26 + $0x18] sm:$0xff]  ;;  %v444_v32 = vld [vmem:[%s1245_s26 + $0x10] sm:$0xff]  ;;  %v443_v33 = vld [vmem:[%s1245_s26 + $0x8] sm:$0xff] }
  0x5c   : > { %738 = vmatprep.subr.mxu0 %v342_v9  ;;  %771 = vmatprep.subr.mxu1 %v453_v23  ;;  %v442_v34 = vld [vmem:[%s1245_s26] sm:$0xff]  ;;  %v441_v50 = vld [vmem:[#allocation2 + $0x8] sm:$0xff] }
  0x5d   : > { %739 = vmatpush3.msra.mxu0 %v342_v9  ;;  %772 = vmatpush3.msra.mxu1 %v453_v23  ;;  %v684_v35 = vld [vmem:[%s321_s25] ss:$0 sm:$0xff] }
  0x5e   : > { %740 = vmatprep.subr.mxu0 %v341_v11  ;;  %773 = vmatprep.subr.mxu1 %v452_v24  ;;  %v440_v52 = vld [vmem:[#allocation2] sm:$0xff] }
  0x5f   : > { %741 = vmatpush3.msra.mxu0 %v341_v11  ;;  %774 = vmatpush3.msra.mxu1 %v452_v24 }
  0x60   : > { %742 = vmatprep.subr.mxu0 %v340_v12  ;;  %775 = vmatprep.subr.mxu1 %v451_v25 }
  0x61   : > { %743 = vmatpush3.msra.mxu0 %v340_v12  ;;  %776 = vmatpush3.msra.mxu1 %v451_v25 }
  0x62   : > { %744 = vmatprep.subr.mxu0 %v339_v13  ;;  %777 = vmatprep.subr.mxu1 %v450_v26 }
  0x63   : > { %745 = vmatpush3.msra.mxu0 %v339_v13  ;;  %778 = vmatpush3.msra.mxu1 %v450_v26 }
  0x64   : > { %746 = vmatprep.subr.mxu0 %v338_v14  ;;  %779 = vmatprep.subr.mxu1 %v449_v27 }
  0x65   : > { %747 = vmatpush3.msra.mxu0 %v338_v14  ;;  %780 = vmatpush3.msra.mxu1 %v449_v27 }
  0x66   : > { %748 = vmatprep.subr.mxu0 %v337_v15  ;;  %781 = vmatprep.subr.mxu1 %v448_v28 }
  0x67   : > { %749 = vmatpush3.msra.mxu0 %v337_v15  ;;  %782 = vmatpush3.msra.mxu1 %v448_v28 }
  0x68   : > { %750 = vmatprep.subr.mxu0 %v336_v16  ;;  %783 = vmatprep.subr.mxu1 %v447_v29 }
  0x69   : > { %751 = vmatpush3.msra.mxu0 %v336_v16  ;;  %784 = vmatpush3.msra.mxu1 %v447_v29 }
  0x6a   : > { %752 = vmatprep.subr.mxu0 %v335_v17  ;;  %785 = vmatprep.subr.mxu1 %v446_v30 }
  0x6b   : > { %753 = vmatpush3.msra.mxu0 %v335_v17  ;;  %786 = vmatpush3.msra.mxu1 %v446_v30 }
  0x6c   : > { %754 = vmatprep.subr.mxu0 %v334_v18  ;;  %787 = vmatprep.subr.mxu1 %v445_v31 }
  0x6d   : > { %755 = vmatpush3.msra.mxu0 %v334_v18  ;;  %788 = vmatpush3.msra.mxu1 %v445_v31 }
  0x6e   : > { %756 = vmatprep.subr.mxu0 %v333_v19  ;;  %789 = vmatprep.subr.mxu1 %v444_v32 }
  0x6f   : > { %757 = vmatpush3.msra.mxu0 %v333_v19  ;;  %790 = vmatpush3.msra.mxu1 %v444_v32 }
  0x70   : > { %758 = vmatprep.subr.mxu0 %v332_v20  ;;  %791 = vmatprep.subr.mxu1 %v443_v33 }
  0x71   : > { %759 = vmatpush3.msra.mxu0 %v332_v20  ;;  %792 = vmatpush3.msra.mxu1 %v443_v33 }
  0x72   : > { %761 = vmatmul.mubr.f32.vlgmr.msra.gmra.mxu0 %v331_v21  ;;  %793 = vmatprep.subr.mxu1 %v442_v34 }
  0x73   : > { %794 = vmatpush3.msra.mxu1 %v442_v34 }
 0x132   : > { %v762_v36 = vpop.f32.mrf.mxu0 }
 0x133   : > { %v427_v37 = vadd.f32 %v762_v36, %v684_v35 }
 0x134   : > { %v421_v38 = vpop.f32.mrf.mxu0 }
 0x135   : > { %v433_v39 = vmul.f32 0.70710677, %v427_v37  ;;  %v422_v40 = vadd.f32 %v684_v35, %v421_v38  ;;  %v431_v47 = vmul.f32 0.5, %v427_v37 }
 0x137   : > { %882 = verf.f32 %v433_v39  ;;  %v432_v41 = vmul.f32 0.70710677, %v422_v40  ;;  %v430_v45 = vmul.f32 0.5, %v422_v40 }
 0x139   : > { %884 = verf.f32 %v432_v41 }
 0x144   : > { %v883_v42 = vpop.eup %882 }
 0x145   : > { %v437_v44 = vadd.f32 1.0, %v883_v42 }
 0x146   : > { %v885_v43 = vpop.eup %884 }
 0x147   : > { %v436_v46 = vadd.f32 1.0, %v885_v43  ;;  %v439_v49 = vmul.f32 %v437_v44, %v431_v47 }
 0x149   : > { %v438_v48 = vmul.f32 %v436_v46, %v430_v45 }
 0x14b   : > { %795 = vmatprep.mubr.f32.mxu1 %v438_v48 }
 0x14c   : > { %796 = vmatmul.mubr.f32.vlgmr.msra.gmra.mxu1 %v439_v49 }
 0x20c   : > { %v797_v51 = vpop.f32.mrf.mxu1 }
 0x20d   : > { %v534_v53 = vadd.f32 %v797_v51, %v441_v50  ;;  %540 = sbr.rel (%p685_p5) target bundleno = 540 (0x21c), region = 60 }
 0x20e   : > { %v524_v54 = vpop.f32.mrf.mxu1 }
 0x20f   : > { %536 = vst [vmem:[#allocation2 + $0x8] sm:$0xff] %v534_v53  ;;  %v533_v55 = vadd.f32 %v524_v54, %v440_v52 }
 0x211   : > { %535 = vst [vmem:[#allocation2] sm:$0xff] %v533_v55 }
 0x212   : > { %v686_v57 = vld [vmem:[%s1323_s4] ss:$0 sm:$0xff] }
 0x216   : > { %v542_v58 = vld [vmem:[#allocation2 + $0x8] sm:$0xff] }
 0x217   : > { %v551_v60 = vadd.f32 %v686_v57, %v542_v58 }
 0x218   : > { %v541_v56 = vld [vmem:[#allocation2] sm:$0xff] }
 0x219   : > { %v550_v59 = vadd.f32 %v686_v57, %v541_v56  ;;  %553 = vst [vmem:[#allocation9 + $0x8] sm:$0xff] %v551_v60 }
 0x21b   : > { %552 = vst [vmem:[#allocation9] sm:$0xff] %v550_v59 }
 0x21c PF: > { %p824_p8 = scmp.eq.s32.totalorder %s1167_s29, 2  ;;  %s1059_s11 = smov [#allocation9]  }
 0x21d   : > { %s563_s13 = sshll.u32 %s1059_s11, 4  ;;  %s564_s13 = int_to_ptr.vmem [resolvable:$true] %s563_s13 }
 0x21e   : > { %s968_s14 = scalar_lea.vmem %s564_s13, 256  ;;  %p975_p9 = scmp.lt.s32.totalorder %s564_s13, %s564_s13 }
 0x21f   : > { %p969_p10 = scmp.ne.s32.totalorder %s564_s13, %s968_s14  ;;  %p976_p11 = scmp.lt.s32.totalorder %s968_s14, %s968_s14 }
 0x221   : > { %p970_p4 = pnand %p969_p10, %p824_p8  ;;  %p977_p12 = por %p976_p11, %p975_p9 }
 0x223   : > { %p971_p7 = pneg %p970_p4 }
 0x225   : > { %p978_p13 = pnand %p977_p12, %p971_p7 }
 0x227   : > { %981 = shalt.err (!%p978_p13)
}
 0x228   : > { %s1060_s21 = smov 128   ;;  %s1061_s27 = smov 8  }
 0x229   : > { %807 = dma.vmem_to_hbm [thread:$0]  (%p824_p8), %s564_s13, 256, %s1324_s5, [#allocation5], %s1060_s21, %s1060_s21, %s1061_s27  }
 0x22a   : > { %1025 = dma.done.wait (%p824_p8), [#allocation5], 256  }
 0x22b   : > { %1027 = vsyncadd (%p824_p8), [#allocation5], 4294967040 }
 0x22c PF: > { %s20_s23 = sadd.s32 1, %s1050_s23   ;;  %s1336_s18 = smov %s1034_s19 }
 0x22d   : > { %p17_p0 = scmp.ge.s32.totalorder %s20_s23, 5   ;;  %s1337_s19 = smov %s1038_s20 }
 0x22e   : > { %s1338_s20 = smov %s1139_s30  ;;  %s1339_s21 = smov %s1046_s22 }
 0x22f   : > { %s1340_s22 = smov %s1342_s24  ;;  %19 = sbr.rel (!%p17_p0) target bundleno = 6 (0x6), region = 106 }
 0x234   :  { %579 = vsyncpa [#allocation4], 1 }
 0x235   :  { %581 = vsyncpa [#allocation4 + $0x1], 1 }
 0x236   :  { %582 = vsyncpa [#allocation7], 1 }
 0x237   :  { %584 = vsyncpa [#allocation7 + $0x1], 1 }
 0x238   :  { %585 = vsyncpa [#allocation5], 1 }
 0x239   :  { %587 = vsyncpa [#allocation5 + $0x1], 1 }

</bundles_post_ra>
